<compile_context>
chip_gen: v5e
topology: v5e:2x2
jax: 0.10.0
libtpu: 0.0.40
codegen_flags: <defaults>
</compile_context>

<pallas_src>
import functools

import jax
import jax.numpy as jnp
from jax import lax
from jax.experimental import pallas as pl
from jax.experimental.pallas import tpu as pltpu

# f32 working-set target per block (x upcast dominates); the real live VMEM is
# roughly 5-6x this (xm, y, double-buffered in/out DMA tiles), which the
# explicit vmem_limit_bytes below budgets for.
_TARGET_F32_BLOCK_BYTES = 2 << 20  # ~2 MiB


def _layernorm_kernel(x_ref, g_ref, b_ref, o_ref, *, eps, inv_c):
    # x_ref: (1, C, t) or (1, C, S, 128); g_ref/b_ref: (1, C, 1[, 1]) f32.
    # Reduction axis is always axis=1 (channels).
    x = x_ref[...].astype(jnp.float32)
    mean = jnp.sum(x, axis=1, keepdims=True) * inv_c
    xm = x - mean                                   # reused for the output
    var = jnp.sum(xm * xm, axis=1, keepdims=True) * inv_c   # unbiased=False
    inv = lax.rsqrt(var + eps)
    o_ref[...] = (xm * inv * g_ref[...] + b_ref[...]).astype(o_ref.dtype)


def layernorm_nchw(x, g, b):
    """x: (N, C, H, W); g, b: (1, C, 1, 1). Returns (N, C, H, W)."""
    N, C, H, W = x.shape
    HW = H * W
    eps = 1e-5 if x.dtype == jnp.float32 else 1e-3  # matches the torch module
    itemsize = jnp.dtype(x.dtype).itemsize
    kernel = functools.partial(_layernorm_kernel, eps=eps, inv_c=1.0 / C)

    # Lane budget from the f32 working set (not the input itemsize).
    f32_itemsize = max(itemsize, 4)
    budget_lanes = max(128, (_TARGET_F32_BLOCK_BYTES // (C * f32_itemsize))
                       // 128 * 128)

    if HW % 128 == 0:
        # 4-D layout: C sits above the (sublane, lane) dims, so the channel
        # reduction is element-wise VALU adds over full (8,128) slabs.
        full_slabs = HW // 128
        budget_slabs = max(8, budget_lanes // 128)
        if full_slabs <= budget_slabs:
            s = full_slabs
        else:
            s = (budget_slabs // 8) * 8
        # Keep >= 2 parallel grid steps for v7x's two TensorCores.
        if N < 2 and s == full_slabs and full_slabs >= 16:
            s = ((full_slabs // 2) // 8) * 8
        x_in = x.reshape(N, C, full_slabs, 128)
        g_in = g.reshape(1, C, 1, 1).astype(jnp.float32)
        b_in = b.reshape(1, C, 1, 1).astype(jnp.float32)
        grid = (N, pl.cdiv(full_slabs, s))
        x_spec = pl.BlockSpec((1, C, s, 128), lambda n, j: (n, 0, j, 0))
        gb_spec = pl.BlockSpec((1, C, 1, 1), lambda n, j: (0, 0, 0, 0))
        out_spec = pl.BlockSpec((1, C, s, 128), lambda n, j: (n, 0, j, 0))
        out_shape = jax.ShapeDtypeStruct((N, C, full_slabs, 128), x.dtype)
        block_f32_bytes = C * s * 128 * 4
    else:
        # 3-D fallback: C on the sublane (reduction) axis, HW on lanes.
        if HW <= budget_lanes:
            t = HW                                  # full extent: layout-legal
            if N < 2 and HW >= 256:
                t = ((HW // 2) // 128) * 128        # keep >= 2 grid steps
                if t == 0:
                    t = HW
        else:
            t = budget_lanes                        # multiple of 128
        x_in = x.reshape(N, C, HW)
        g_in = g.reshape(1, C, 1).astype(jnp.float32)
        b_in = b.reshape(1, C, 1).astype(jnp.float32)
        grid = (N, pl.cdiv(HW, t))
        x_spec = pl.BlockSpec((1, C, t), lambda n, j: (n, 0, j))
        gb_spec = pl.BlockSpec((1, C, 1), lambda n, j: (0, 0, 0))
        out_spec = pl.BlockSpec((1, C, t), lambda n, j: (n, 0, j))
        out_shape = jax.ShapeDtypeStruct((N, C, HW), x.dtype)
        block_f32_bytes = C * t * 4

    # ~6 block-sized f32 buffers live per step, x2 for double buffering, plus
    # headroom; keep above v5e's 16 MiB scoped default and below v7x's 64 MiB.
    vmem_limit = int(min(48 << 20, max(32 << 20, 12 * block_f32_bytes)))

    out = pl.pallas_call(
        kernel,
        out_shape=out_shape,
        grid_spec=pltpu.PrefetchScalarGridSpec(
            num_scalar_prefetch=0,
            grid=grid,
            in_specs=[x_spec, gb_spec, gb_spec],
            out_specs=out_spec,
        ),
        compiler_params=pltpu.CompilerParams(
            dimension_semantics=("parallel", "parallel"),
            vmem_limit_bytes=vmem_limit),
        cost_estimate=pl.CostEstimate(
            flops=8 * N * C * HW,
            transcendentals=N * HW,
            bytes_accessed=2 * N * C * HW * itemsize + 2 * C * 4),
    )(x_in, g_in, b_in)

    return out.reshape(N, C, H, W)


def _reference(x, g, b):
    eps = 1e-5 if x.dtype == jnp.float32 else 1e-3
    xf = x.astype(jnp.float32)
    mean = jnp.mean(xf, axis=1, keepdims=True)
    var = jnp.mean((xf - mean) ** 2, axis=1, keepdims=True)
    y = (xf - mean) * lax.rsqrt(var + eps) * g.astype(jnp.float32) + b.astype(
        jnp.float32)
    return y.astype(x.dtype)


def _check(x, g, b, atol):
    out = jax.block_until_ready(layernorm_nchw(x, g, b))
    ref = _reference(x, g, b)
    assert out.shape == x.shape and out.dtype == x.dtype
    err = float(jnp.max(jnp.abs(out.astype(jnp.float32) -
                                ref.astype(jnp.float32))))
    assert err <= atol, (x.shape, x.dtype, err)


if __name__ == "__main__":
    key = jax.random.PRNGKey(0)
    N, C, H, W = 2, 4, 16, 16

    # Deterministic parameter init (matches nn.Parameter init in __init__).
    g = jnp.ones((1, C, 1, 1), dtype=jnp.float32)
    b = jnp.zeros((1, C, 1, 1), dtype=jnp.float32)

    # f32, HW % 128 == 0 -> 4-D slab layout.
    x_f32 = jax.random.normal(key, (N, C, H, W), dtype=jnp.float32)
    _check(x_f32, g, b, atol=1e-5)

    # bf16 (eps = 1e-3 path, f32 upcast inside the kernel).
    x_bf16 = (10.0 + jax.random.normal(key, (N, C, H, W),
                                       dtype=jnp.float32)).astype(jnp.bfloat16)
    _check(x_bf16, g, b, atol=2e-2)

    # Ragged spatial extent (HW not a multiple of 128) -> 3-D fallback path.
    x_rag = jax.random.normal(key, (1, C, 10, 10), dtype=jnp.float32)
    _check(x_rag, g, b, atol=1e-5)

    print("KERNEL_OK")
</pallas_src>

<mosaic_0001>
module attributes {stable_mosaic.version = 11 : i64} {
  func.func @_layernorm_kernel(%arg0: i32, %arg1: i32, %arg2: memref<1x4x2x128xf32, #tpu.memory_space<vmem>>, %arg3: memref<1x4x1x1xf32, #tpu.memory_space<vmem>>, %arg4: memref<1x4x1x1xf32, #tpu.memory_space<vmem>>, %arg5: memref<1x4x2x128xf32, #tpu.memory_space<vmem>>) attributes {dimension_semantics = [#tpu.dimension_semantics<parallel>, #tpu.dimension_semantics<parallel>], iteration_bounds = array<i64: 2, 1>, scalar_prefetch = 0 : i64, scratch_operands = 0 : i64, tpu.core_type = #tpu.core_type<tc>, window_params = [{transform_indices = @transform_0, window_bounds = array<i64: 1, 4, 2, 128>}, {pipeline_mode = #tpu.pipeline_mode<synchronous>, transform_indices = @transform_1, window_bounds = array<i64: 1, 4, 1, 1>}, {pipeline_mode = #tpu.pipeline_mode<synchronous>, transform_indices = @transform_2, window_bounds = array<i64: 1, 4, 1, 1>}, {transform_indices = @transform_3, window_bounds = array<i64: 1, 4, 2, 128>}]} {
    %c0 = arith.constant 0 : index
    %c0_0 = arith.constant 0 : index
    %c0_1 = arith.constant 0 : index
    %c0_2 = arith.constant 0 : index
    %0 = vector.load %arg2[%c0, %c0_0, %c0_1, %c0_2] : memref<1x4x2x128xf32, #tpu.memory_space<vmem>>, vector<1x4x2x128xf32>
    %cst = arith.constant dense<0.000000e+00> : vector<1x2x128xf32>
    %1 = vector.multi_reduction <add>, %0, %cst [1] : vector<1x4x2x128xf32> to vector<1x2x128xf32>
    %2 = vector.shape_cast %1 : vector<1x2x128xf32> to vector<1x1x2x128xf32>
    %cst_3 = arith.constant 2.500000e-01 : f32
    %3 = vector.broadcast %cst_3 : f32 to vector<1x1x2x128xf32>
    %4 = arith.mulf %2, %3 : vector<1x1x2x128xf32>
    %5 = vector.broadcast %4 : vector<1x1x2x128xf32> to vector<1x4x2x128xf32>
    %6 = arith.subf %0, %5 : vector<1x4x2x128xf32>
    %7 = arith.mulf %6, %6 : vector<1x4x2x128xf32>
    %cst_4 = arith.constant dense<0.000000e+00> : vector<1x2x128xf32>
    %8 = vector.multi_reduction <add>, %7, %cst_4 [1] : vector<1x4x2x128xf32> to vector<1x2x128xf32>
    %9 = vector.shape_cast %8 : vector<1x2x128xf32> to vector<1x1x2x128xf32>
    %cst_5 = arith.constant 2.500000e-01 : f32
    %10 = vector.broadcast %cst_5 : f32 to vector<1x1x2x128xf32>
    %11 = arith.mulf %9, %10 : vector<1x1x2x128xf32>
    %cst_6 = arith.constant 9.99999974E-6 : f32
    %12 = vector.broadcast %cst_6 : f32 to vector<1x1x2x128xf32>
    %13 = arith.addf %11, %12 : vector<1x1x2x128xf32>
    %14 = math.rsqrt %13 : vector<1x1x2x128xf32>
    %15 = vector.broadcast %14 : vector<1x1x2x128xf32> to vector<1x4x2x128xf32>
    %16 = arith.mulf %6, %15 : vector<1x4x2x128xf32>
    %c0_7 = arith.constant 0 : index
    %c0_8 = arith.constant 0 : index
    %c0_9 = arith.constant 0 : index
    %c0_10 = arith.constant 0 : index
    %17 = vector.load %arg3[%c0_7, %c0_8, %c0_9, %c0_10] : memref<1x4x1x1xf32, #tpu.memory_space<vmem>>, vector<1x4x1x1xf32>
    %18 = vector.broadcast %17 : vector<1x4x1x1xf32> to vector<1x4x2x128xf32>
    %19 = arith.mulf %16, %18 : vector<1x4x2x128xf32>
    %c0_11 = arith.constant 0 : index
    %c0_12 = arith.constant 0 : index
    %c0_13 = arith.constant 0 : index
    %c0_14 = arith.constant 0 : index
    %20 = vector.load %arg4[%c0_11, %c0_12, %c0_13, %c0_14] : memref<1x4x1x1xf32, #tpu.memory_space<vmem>>, vector<1x4x1x1xf32>
    %21 = vector.broadcast %20 : vector<1x4x1x1xf32> to vector<1x4x2x128xf32>
    %22 = arith.addf %19, %21 : vector<1x4x2x128xf32>
    %c0_15 = arith.constant 0 : index
    %c0_16 = arith.constant 0 : index
    %c0_17 = arith.constant 0 : index
    %c0_18 = arith.constant 0 : index
    %23 = vector.load %arg5[%c0_15, %c0_16, %c0_17, %c0_18] : memref<1x4x2x128xf32, #tpu.memory_space<vmem>>, vector<1x4x2x128xf32>
    tpu.vector_store %arg5[%c0_15, %c0_16, %c0_17, %c0_18], %22 {strides = array<i32>} : memref<1x4x2x128xf32, #tpu.memory_space<vmem>>, vector<1x4x2x128xf32>,
    return
  }
  func.func @transform_0(%arg0: i32, %arg1: i32) -> (i32, i32, i32, i32) {
    %c0_i32 = arith.constant 0 : i32
    %c0_i32_0 = arith.constant 0 : i32
    %c0_i32_1 = arith.constant 0 : i32
    return %arg0, %c0_i32, %arg1, %c0_i32_0 : i32, i32, i32, i32
  }
  func.func @transform_1(%arg0: i32, %arg1: i32) -> (i32, i32, i32, i32) {
    %c0_i32 = arith.constant 0 : i32
    %c0_i32_0 = arith.constant 0 : i32
    %c0_i32_1 = arith.constant 0 : i32
    %c0_i32_2 = arith.constant 0 : i32
    %c0_i32_3 = arith.constant 0 : i32
    return %c0_i32, %c0_i32_0, %c0_i32_1, %c0_i32_2 : i32, i32, i32, i32
  }
  func.func @transform_2(%arg0: i32, %arg1: i32) -> (i32, i32, i32, i32) {
    %c0_i32 = arith.constant 0 : i32
    %c0_i32_0 = arith.constant 0 : i32
    %c0_i32_1 = arith.constant 0 : i32
    %c0_i32_2 = arith.constant 0 : i32
    %c0_i32_3 = arith.constant 0 : i32
    return %c0_i32, %c0_i32_0, %c0_i32_1, %c0_i32_2 : i32, i32, i32, i32
  }
  func.func @transform_3(%arg0: i32, %arg1: i32) -> (i32, i32, i32, i32) {
    %c0_i32 = arith.constant 0 : i32
    %c0_i32_0 = arith.constant 0 : i32
    %c0_i32_1 = arith.constant 0 : i32
    return %arg0, %c0_i32, %arg1, %c0_i32_0 : i32, i32, i32, i32
  }
}

</mosaic_0001>

<bundles_post_ra>
// kernel: tpu_custom_call.1
= control target key start
LH: loop header
LB: loop body
LE: loop exit
PB: predicated region body
PF: predicated region fallthrough
CT: control target
= control target key end

     0   :  { %8 = vsyncpa [#allocation3], 0  ;;  %s820_s0 = inlined_call_operand.hbm [shape: f32[2,4,2,128], index: 0, kind: input, shape index: {}]   ;;  %s821_s1 = inlined_call_operand.vmem [shape: f32[1,4,1,1], index: 1, kind: input, shape index: {}]   ;;  %s822_s2 = inlined_call_operand.vmem [shape: f32[1,4,1,1], index: 2, kind: input, shape index: {}]   ;;  %s823_s3 = inlined_call_operand.hbm [shape: f32[2,4,2,128], index: 3, kind: output, shape index: {}]  }
   0x1   :  { %10 = vsyncpa [#allocation3 + $0x1], 0 }
   0x2   :  { %11 = vsyncpa [#allocation4], 0 }
   0x3   :  { %13 = vsyncpa [#allocation4 + $0x1], 0  ;;  %s658_s12 = smov 0   ;;  %s660_s13 = smov 0  }
   0x4   :  { %s662_s14 = smov 0   ;;  %s664_s15 = smov 0  }
   0x5   :  { %s666_s16 = smov 0   ;;  %s668_s17 = smov 0  }
   0x6 LB: > { %s422_s18 = sadd.s32 4294967295, %s631_s17   ;;  %s423_s19 = sadd.s32 4294967294, %s631_s17   ;;  %s631_s17 = sphi %s668_s17, %s19_s17   ;;  %s627_s16 = sphi %s666_s16, %s832_s16   ;;  %s623_s15 = sphi %s664_s15, %s831_s15   ;;  %s619_s14 = sphi %s662_s14, %s830_s14   ;;  %s615_s13 = sphi %s660_s13, %s829_s13   ;;  %s611_s12 = sphi %s658_s12, %s828_s12  }
   0x7   : > { %s31_s20 = sadd.s32 1, %s627_s16  ;;  %s40_s21 = sadd.s32 1, %s619_s14 }
   0x8   : > { %p33_p0 = scmp.ge.s32.totalorder %s31_s20, 2  ;;  %p47_p1 = scmp.ne.s32.totalorder %s619_s14, %s615_s13 }
   0x9   : > { %p48_p2 = scmp.eq.s32.totalorder %s631_s17, 0  ;;  %p53_p3 = scmp.ne.s32.totalorder %s615_s13, %s611_s12 }
   0xa   : > { %s834_s20 = smov (%p33_p0, %s31_s20), 0  ;;  %p54_p5 = scmp.eq.s32.totalorder %s422_s18, 0 }
   0xb   : > { %p699_p4 = por %p48_p2, %p47_p1  ;;  %s35_s23 = ssub.s32 %s627_s16, %s834_s20 }
   0xc   : > { %p121_p6 = scmp.eq.s32.totalorder %s422_s18, 1  ;;  %p38_p7 = scmp.eq.s32.totalorder %s35_s23, 0 }
   0xd   : > { %p705_p8 = por %p54_p5, %p53_p3  ;;  %p127_p10 = scmp.eq.s32.totalorder %s423_s19, 1 }
   0xe   : > { %p709_p9 = por %p121_p6, %p47_p1  ;;  %p425_p12 = scmp.ge.s32.totalorder %s631_s17, 2 }
   0xf   : > { %s714_s26 = scalar_select %p38_p7, %s619_s14, %s40_s21  }
  0x10   : > { %p716_p11 = por %p127_p10, %p53_p3  ;;  %p451_p13 = scmp.lt.s32.totalorder %s631_s17, 2 }
  0x11   : > { %s153_s28 = sand.u32 1, %s619_s14   ;;  %s437_s30 = sshll.u32 %s627_s16, 3 }
  0x12   : > { %s426_s29 = sshll.u32 %s153_s28, 3  ;;  %s163_s6 = scalar_lea.hbm %s820_s0, %s437_s30 }
  0x13   : > { %s157_s7 = scalar_lea.vmem [#allocation2], %s426_s29  ;;  %s164_s9 = sshll.u32 %s163_s6, 4  ;;  %s165_s9 = int_to_ptr.hbm [resolvable:$true] %s164_s9 }
  0x14   : > { %s166_s8 = sshll.u32 %s157_s7, 4  ;;  %p444_p0 = pnand %p451_p13, %p699_p4  ;;  %s167_s8 = int_to_ptr.vmem [resolvable:$true] %s166_s8 }
  0x15   : > { %p429_p1 = scmp.ge.s32.totalorder %s631_s17, 1  ;;  %s154_s10 = scalar_lea.sflag [#allocation3], %s153_s28 }
  0x16   : > { %s633_s11 = smov 32   ;;  %s634_s18 = smov 2  }
  0x17   : > { %446 = dma.hbm_to_vmem [thread:$0]  (!%p444_p0), %s165_s9, 128, %s167_s8, %s154_s10, %s633_s11, %s633_s11, %s634_s18  }
  0x18   : > { %p174_p2 = scmp.lt.s32.totalorder %s631_s17, 3 }
  0x1a   : > { %p175_p3 = pnand %p429_p1, %p174_p2 }
  0x1b   : > { %s732_s19 = sand.u32 (!%p175_p3), 1, %s615_s13  }
  0x1c   : > { %178 = sbr.rel (%p175_p3) target bundleno = 174 (0xae), region = 32  ;;  %s430_s21 = sshll.u32 (!%p175_p3), %s732_s19, 3 }
  0x1d   : > { %s181_s23 = scalar_lea.sflag (!%p175_p3), [#allocation3], %s732_s19  ;;  %s738_s22 = scalar_lea.vmem (!%p175_p3), [#allocation2], %s430_s21 }
  0x21   : > { %602 = dma.done.wait (%p705_p8), %s181_s23, 128  }
  0x22   : > { %604 = vsyncadd (%p705_p8), %s181_s23, 4294967168  ;;  %v635_v0 = vmov 0   ;;  %v509_v1 = vld [vmem:[%s821_s1 + $0x2] ss:$0 sm:$0xff]  ;;  %v510_v2 = vld [vmem:[%s821_s1] ss:$0 sm:$0xff] }
  0x23   : > { %507 = vset.pattern.permute.xlu1 %v635_v0  ;;  %506 = vset.pattern.permute.xlu0 %v635_v0  ;;  %v515_v3 = vld [vmem:[%s822_s2] ss:$0 sm:$0xff]  ;;  %v511_v4 = vld [vmem:[%s821_s1 + $0x3] ss:$0 sm:$0xff]  ;;  %v512_v5 = vld [vmem:[%s821_s1 + $0x1] ss:$0 sm:$0xff] }
  0x24   : > { %508 = vset.pattern.permute.xlu2 %v635_v0  ;;  %273 = vperm.xlu1 %507, %v509_v1   ;;  %v516_v6 = vld [vmem:[%s822_s2 + $0x1] ss:$0 sm:$0xff]  ;;  %v513_v7 = vld [vmem:[%s822_s2 + $0x3] ss:$0 sm:$0xff]  ;;  %v514_v8 = vld [vmem:[%s822_s2 + $0x2] ss:$0 sm:$0xff] }
  0x25   : > { %265 = vperm.xlu0 %506, %v510_v2   ;;  %297 = vperm.xlu2 %508, %v515_v3   ;;  %vm212_vm0 = vcmask 1041408   ;;  %v208_v9 = vld [vmem:[%s738_s22] sm:$0x3]  ;;  %v209_v10 = vld [vmem:[%s738_s22 + $0x2] sm:$0x3]  ;;  %s438_s30 = sshll.u32 %s623_s15, 3 }
  0x26   : > { %v213_v11 = vsel %vm212_vm0, %v208_v9, 0.0  ;;  %v214_v12 = vsel %vm212_vm0, %v209_v10, 0.0  ;;  %v210_v13 = vld [vmem:[%s738_s22 + $0x4] sm:$0x3]  ;;  %v211_v16 = vld [vmem:[%s738_s22 + $0x6] sm:$0x3]  ;;  %s333_s6 = scalar_lea.hbm %s823_s3, %s438_s30 }
  0x27   : > { %v215_v14 = vadd.f32 %v214_v12, %v213_v11  ;;  %v216_v15 = vsel %vm212_vm0, %v210_v13, 0.0  ;;  %v218_v18 = vsel %vm212_vm0, %v211_v16, 0.0  ;;  %s207_s22 = scalar_lea.vmem [#allocation5], %s430_s21  ;;  %s336_s7 = sshll.u32 %s333_s6, 4  ;;  %s337_s7 = int_to_ptr.hbm [resolvable:$true] %s336_s7 }
  0x28   : > { %s334_s24 = sshll.u32 %s207_s22, 4  ;;  %s321_s15 = scalar_lea.sflag [#allocation4], %s732_s19  ;;  %s335_s24 = int_to_ptr.vmem [resolvable:$true] %s334_s24 }
  0x29   : > { %v217_v17 = vadd.f32 %v216_v15, %v215_v14  ;;  %s563_s21 = sshra.s32 %s337_s7, 4  ;;  %s569_s11 = scalar_lea.hbm %s823_s3, 16  ;;  %s564_s21 = int_to_ptr.hbm [resolvable:$true] %s563_s21 }
  0x2a   : > { %s565_s8 = scalar_lea.hbm %s564_s21, 8  ;;  %p570_p7 = scmp.lt.s32.totalorder %s564_s21, %s823_s3 }
  0x2b   : > { %v219_v19 = vadd.f32 %v218_v18, %v217_v17  ;;  %p566_p4 = scmp.ne.s32.totalorder %s564_s21, %s565_s8  ;;  %p571_p8 = scmp.lt.s32.totalorder %s569_s11, %s565_s8 }
  0x2c   : > { %277 = vperm.xlu1 %507, %v511_v4  }
  0x2d   : > { %269 = vperm.xlu0 %506, %v512_v5   ;;  %301 = vperm.xlu2 %508, %v516_v6   ;;  %v220_v20 = vmul.f32 0.25, %v219_v19  ;;  %p567_p5 = pnand %p566_p4, %p709_p9  ;;  %p572_p10 = por %p571_p8, %p570_p7 }
  0x2f   : > { %v221_v21 = vsub.f32 %v208_v9, %v220_v20  ;;  %v222_v22 = vsub.f32 %v209_v10, %v220_v20  ;;  %v223_v23 = vsub.f32 %v210_v13, %v220_v20  ;;  %v224_v26 = vsub.f32 %v211_v16, %v220_v20  ;;  %p568_p6 = pneg %p567_p5 }
  0x31   : > { %v225_v24 = vmul.f32 %v221_v21, %v221_v21  ;;  %v226_v25 = vmul.f32 %v222_v22, %v222_v22  ;;  %v227_v27 = vmul.f32 %v223_v23, %v223_v23  ;;  %v228_v31 = vmul.f32 %v224_v26, %v224_v26  ;;  %p573_p13 = pnand %p572_p10, %p568_p6 }
  0x33   : > { %v229_v28 = vsel %vm212_vm0, %v225_v24, 0.0  ;;  %v230_v29 = vsel %vm212_vm0, %v226_v25, 0.0  ;;  %v232_v32 = vsel %vm212_vm0, %v227_v27, 0.0  ;;  %v234_v34 = vsel %vm212_vm0, %v228_v31, 0.0 }
  0x34   : > { %309 = vperm.xlu1 %507, %v513_v7   ;;  %v231_v30 = vadd.f32 %v230_v29, %v229_v28 }
  0x35   : > { %305 = vperm.xlu0 %506, %v514_v8  }
  0x36   : > { %v233_v33 = vadd.f32 %v232_v32, %v231_v30 }
  0x38   : > { %v235_v35 = vadd.f32 %v234_v34, %v233_v33 }
  0x3a   : > { %v236_v36 = vmul.f32 0.25, %v235_v35 }
  0x3c   : > { %v237_v37 = vadd.f32 1e-05, %v236_v36 }
  0x3e   : > { %517 = vrsqrt.f32 %v237_v37  ;;  %vm244_vm1 = vweird.f32 %v237_v37 }
  0x44   : > { %v518_v38 = vpop.eup %517 }
  0x45   : > { %v239_v39 = vmul.f32 %v518_v38, %v237_v37  ;;  %vm245_vm2 = vweird.f32 %v518_v38 }
  0x46   : > { %vm246_vm3 = vmor %vm244_vm1, %vm245_vm2 }
  0x47   : > { %v240_v40 = vmul.f32 %v518_v38, %v239_v39 }
  0x49   : > { %v241_v41 = vmul.f32 0.5, %v240_v40 }
  0x4b   : > { %v242_v42 = vsub.f32 1.5, %v241_v41 }
  0x4d   : > { %v243_v43 = vmul.f32 %v518_v38, %v242_v42 }
  0x4f   : > { %v247_v44 = vsel %vm246_vm3, %v518_v38, %v243_v43 }
  0x50   : > { %v248_v45 = vmul.f32 %v247_v44, %v221_v21  ;;  %v249_v51 = vmul.f32 %v247_v44, %v222_v22  ;;  %v251_v56 = vmul.f32 %v247_v44, %v224_v26  ;;  %v250_v57 = vmul.f32 %v247_v44, %v223_v23 }
  0x7f   : > { %v298_v47 = vpop.permute.xlu2 %297 }
  0x87   : > { %v302_v55 = vpop.permute.xlu2 %301 }
  0x96   : > { %v274_v46 = vpop.permute.xlu1 %273 }
  0x97   : > { %v266_v48 = vpop.permute.xlu0 %265  ;;  %v282_v60 = vmul.f32 %v274_v46, %v250_v57 }
  0x98   : > { %v280_v49 = vmul.f32 %v266_v48, %v248_v45 }
  0x9a   : > { %v312_v50 = vadd.f32 %v298_v47, %v280_v49 }
  0x9c   : > { %316 = vst [vmem:[%s207_s22] sm:$0x3] %v312_v50 }
  0x9e   : > { %v278_v52 = vpop.permute.xlu1 %277 }
  0x9f   : > { %v270_v53 = vpop.permute.xlu0 %269  ;;  %v283_v59 = vmul.f32 %v278_v52, %v251_v56 }
  0xa0   : > { %v281_v54 = vmul.f32 %v270_v53, %v249_v51 }
  0xa2   : > { %v313_v58 = vadd.f32 %v302_v55, %v281_v54 }
  0xa4   : > { %317 = vst [vmem:[%s207_s22 + $0x2] sm:$0x3] %v313_v58 }
  0xa6   : > { %v310_v61 = vpop.permute.xlu1 %309 }
  0xa7   : > { %v315_v62 = vadd.f32 %v310_v61, %v283_v59  ;;  %v306_v63 = vpop.permute.xlu0 %305 }
  0xa8   : > { %v314_v0 = vadd.f32 %v306_v63, %v282_v60 }
  0xa9   : > { %319 = vst [vmem:[%s207_s22 + $0x6] sm:$0x3] %v315_v62 }
  0xaa   : > { %318 = vst [vmem:[%s207_s22 + $0x4] sm:$0x3] %v314_v0 }
  0xab   : > { %576 = shalt.err (!%p573_p13)
}
  0xac   : > { %s636_s19 = smov 32   ;;  %s637_s28 = smov 2  }
  0xad   : > { %441 = dma.vmem_to_hbm [thread:$0]  (%p709_p9), %s335_s24, 128, %s337_s7, %s321_s15, %s636_s19, %s636_s19, %s637_s28  }
  0xae PF: > { %s351_s29 = sand.u32 1, %s611_s12   ;;  %p448_p0 = pnand %p425_p12, %p716_p11 }
  0xaf   : > { %s352_s22 = scalar_lea.sflag [#allocation4], %s351_s29 }
  0xb0   : > { %p449_p1 = pneg %p448_p0 }
  0xb2   : > { %606 = dma.done.wait (%p449_p1), %s352_s22, 128  }
  0xb3   : > { %608 = vsyncadd (%p449_p1), %s352_s22, 4294967168  ;;  %s19_s17 = sadd.s32 1, %s631_s17   ;;  %s828_s12 = smov %s615_s13 }
  0xb4   : > { %p16_p2 = scmp.ge.s32.totalorder %s19_s17, 4   ;;  %s829_s13 = smov %s619_s14 }
  0xb5   : > { %s830_s14 = smov %s714_s26  ;;  %s831_s15 = smov %s627_s16 }
  0xb6   : > { %s832_s16 = smov %s834_s20  ;;  %18 = sbr.rel (!%p16_p2) target bundleno = 6 (0x6), region = 77 }
  0xbb   :  { %358 = vsyncpa [#allocation3], 1 }
  0xbc   :  { %360 = vsyncpa [#allocation3 + $0x1], 1 }
  0xbd   :  { %361 = vsyncpa [#allocation4], 1 }
  0xbe   :  { %363 = vsyncpa [#allocation4 + $0x1], 1 }

</bundles_post_ra>
